<compile_context>
chip_gen: v7x
topology: tpu7x:2x2x1
jax: 0.10.0
libtpu: 0.0.40
codegen_flags: <defaults>
</compile_context>

<pallas_src>
import functools

import jax
import jax.numpy as jnp
from jax.experimental import pallas as pl
from jax.experimental.pallas import tpu as pltpu


def basic_block_kernel(x_ref, t1_ref, b1_ref, t2_ref, b2_ref, out_ref):
    """Fused conv3x3 -> bn -> relu -> conv3x3 -> bn -> +identity -> relu.

    Per grid step (NB batch images):
      x_ref:   (NB, H, W*C)   lane-dense input rows, f32 (also the residual)
      t1_ref:  (3, W*C, W*C)  block-Toeplitz conv1 weights (BN1 scale folded), bf16
      b1_ref:  (1, W*C)       folded BN1 bias tiled over W, f32
      t2_ref:  (3, W*C, W*C)  block-Toeplitz conv2 weights (BN2 scale folded), bf16
      b2_ref:  (1, W*C)       folded BN2 bias tiled over W, f32
      out_ref: (NB, H, W*C)   lane-dense output rows, f32
    """
    NB, H, WC = x_ref.shape
    M = NB * H

    x = x_ref[...]                                   # f32; reused as residual
    zrow = jnp.zeros((NB, 1, WC), jnp.bfloat16)

    def toeplitz_conv3x3(v, t_ref):
        # v: (NB, H, WC) bf16.
        # out[y] = v[y-1] @ T[dy=0] + v[y] @ T[dy=1] + v[y+1] @ T[dy=2]
        # (horizontal taps + zero padding are encoded inside each T).
        prev = jnp.concatenate([zrow, v[:, :H - 1, :]], axis=1)
        nxt = jnp.concatenate([v[:, 1:, :], zrow], axis=1)
        acc = jnp.dot(prev.reshape(M, WC), t_ref[0],
                      preferred_element_type=jnp.float32)
        acc += jnp.dot(v.reshape(M, WC), t_ref[1],
                       preferred_element_type=jnp.float32)
        acc += jnp.dot(nxt.reshape(M, WC), t_ref[2],
                       preferred_element_type=jnp.float32)
        return acc                                   # (M, WC) f32

    # conv1 + bn1 + relu  (BN scale already folded into t1; only bias here)
    mid = jnp.maximum(
        toeplitz_conv3x3(x.astype(jnp.bfloat16), t1_ref) + b1_ref[...], 0.0)
    mid = mid.astype(jnp.bfloat16).reshape(NB, H, WC)

    # conv2 + bn2 + residual + relu
    out = toeplitz_conv3x3(mid, t2_ref) + b2_ref[...]
    out = jnp.maximum(out + x.reshape(M, WC), 0.0)
    out_ref[...] = out.reshape(NB, H, WC).astype(out_ref.dtype)


def _toeplitz_weights(w_oihw, scale, W):
    """OIHW conv3x3 weights + per-out-channel scale -> (3, W*Cin, W*Cout) bf16.

    T[dy, xin*Cin + ci, xout*Cout + co] = w[co, ci, dy, dx] * scale[co]
    where xin = xout + dx - 1 (zero outside [0, W), i.e. padding=1).
    """
    Cout, Cin, KH, KW = w_oihw.shape
    assert KH == 3 and KW == 3
    w = jnp.transpose(w_oihw, (2, 3, 1, 0)).astype(jnp.float32)  # (dy,dx,ci,co)
    w = w * scale[None, None, None, :]                           # fold BN scale
    planes = []
    for dy in range(3):
        t = jnp.zeros((W * Cin, W * Cout), jnp.float32)
        for dx in range(3):
            # band[xin, xout] = 1  iff  xin == xout + dx - 1
            band = jnp.eye(W, W, k=1 - dx, dtype=jnp.float32)
            t = t + jnp.kron(band, w[dy, dx])
        planes.append(t)
    return jnp.stack(planes).astype(jnp.bfloat16)


@functools.partial(jax.jit, static_argnames=("eps", "images_per_step"))
def basic_block_pallas(x_nchw, w1_oihw, g1, be1, m1, v1,
                       w2_oihw, g2, be2, m2, v2, eps=1e-5, images_per_step=2):
    """NCHW in / NCHW out wrapper around the fused Pallas kernel."""
    N, Cin, H, W = x_nchw.shape
    Cout = w1_oihw.shape[0]
    # Identity residual requires inplanes == planes and stride == 1.
    assert Cin == Cout, "BasicBlock identity residual needs inplanes == planes"
    assert w2_oihw.shape[0] == Cout and w2_oihw.shape[1] == Cout
    NB = images_per_step
    assert N % NB == 0, "batch must be divisible by images_per_step"
    WC = W * Cout  # best perf when W*C is a multiple of 128 (full-width vst)

    # --- glue: lane-dense layout + BN folding + Toeplitz weights (plain JAX) ---
    x_ld = (jnp.transpose(x_nchw, (0, 2, 3, 1))
            .reshape(N, H, WC).astype(jnp.float32))

    s1 = (g1 / jnp.sqrt(v1 + eps)).astype(jnp.float32)
    b1 = (be1 - m1 * s1).astype(jnp.float32)
    s2 = (g2 / jnp.sqrt(v2 + eps)).astype(jnp.float32)
    b2 = (be2 - m2 * s2).astype(jnp.float32)

    t1 = _toeplitz_weights(w1_oihw, s1, W)           # (3, WC, WC) bf16
    t2 = _toeplitz_weights(w2_oihw, s2, W)
    b1d = jnp.tile(b1, W).reshape(1, WC)             # lane-dense bias
    b2d = jnp.tile(b2, W).reshape(1, WC)

    grid_spec = pltpu.PrefetchScalarGridSpec(
        num_scalar_prefetch=0,
        grid=(N // NB,),
        in_specs=[
            # NB images of lane-dense activation rows per step
            pl.BlockSpec((NB, H, WC), lambda n: (n, 0, 0)),
            # weights / biases: constant block index -> stay VMEM-resident
            pl.BlockSpec((3, WC, WC), lambda n: (0, 0, 0)),
            pl.BlockSpec((1, WC), lambda n: (0, 0)),
            pl.BlockSpec((3, WC, WC), lambda n: (0, 0, 0)),
            pl.BlockSpec((1, WC), lambda n: (0, 0)),
        ],
        out_specs=pl.BlockSpec((NB, H, WC), lambda n: (n, 0, 0)),
    )

    out_ld = pl.pallas_call(
        basic_block_kernel,
        out_shape=jax.ShapeDtypeStruct((N, H, WC), jnp.float32),
        grid_spec=grid_spec,
        compiler_params=pltpu.CompilerParams(
            dimension_semantics=("parallel",)),
    )(x_ld, t1, b1d, t2, b2d)

    out_nhwc = out_ld.reshape(N, H, W, Cout)
    return jnp.transpose(out_nhwc, (0, 3, 1, 2))


def basic_block_reference(x, w1, g1, be1, m1, v1, w2, g2, be2, m2, v2,
                          eps=1e-5):
    """Plain-JAX NCHW reference mirroring the PyTorch forward.

    Matches the kernel's numerics: BN scale folded into the weights before the
    bf16 rounding that the MXU sees, f32 accumulation, f32 bias / ReLU /
    residual, conv2 input rounded to bf16.
    """
    q = lambda t: t.astype(jnp.bfloat16).astype(jnp.float32)

    def conv(xx, ww):
        return jax.lax.conv_general_dilated(
            xx, ww, window_strides=(1, 1), padding=((1, 1), (1, 1)),
            dimension_numbers=("NCHW", "OIHW", "NCHW"))

    def scale_bias(g, be, m, v):
        s = g / jnp.sqrt(v + eps)
        return s, be - m * s

    s1, b1 = scale_bias(g1, be1, m1, v1)
    s2, b2 = scale_bias(g2, be2, m2, v2)
    w1s = w1 * s1[:, None, None, None]
    w2s = w2 * s2[:, None, None, None]

    mid = jax.nn.relu(conv(q(x), q(w1s)) + b1[None, :, None, None])
    out = conv(q(mid), q(w2s)) + b2[None, :, None, None]
    return jax.nn.relu(out + x)


if __name__ == "__main__":
    # inplanes = planes = 8, 16x16 spatial (W * C == 128 -> lane-dense vregs),
    # batch 8 with 2 images per grid step -> 4 grid steps (>=2 per TC on v7x).
    N, C, H, W = 8, 8, 16, 16
    key = jax.random.PRNGKey(0)
    ks = jax.random.split(key, 11)

    x = jax.random.normal(ks[0], (N, C, H, W), jnp.float32)

    # conv weights in PyTorch OIHW layout
    w1 = jax.random.normal(ks[1], (C, C, 3, 3), jnp.float32) * 0.1
    w2 = jax.random.normal(ks[2], (C, C, 3, 3), jnp.float32) * 0.1

    # BatchNorm2d parameters / running stats (inference mode)
    g1 = 1.0 + 0.1 * jax.random.normal(ks[3], (C,), jnp.float32)
    be1 = 0.1 * jax.random.normal(ks[4], (C,), jnp.float32)
    m1 = 0.1 * jax.random.normal(ks[5], (C,), jnp.float32)
    v1 = 1.0 + 0.1 * jnp.abs(jax.random.normal(ks[6], (C,), jnp.float32))
    g2 = 1.0 + 0.1 * jax.random.normal(ks[7], (C,), jnp.float32)
    be2 = 0.1 * jax.random.normal(ks[8], (C,), jnp.float32)
    m2 = 0.1 * jax.random.normal(ks[9], (C,), jnp.float32)
    v2 = 1.0 + 0.1 * jnp.abs(jax.random.normal(ks[10], (C,), jnp.float32))

    out = basic_block_pallas(x, w1, g1, be1, m1, v1, w2, g2, be2, m2, v2)
    out = jax.block_until_ready(out)

    ref = basic_block_reference(x, w1, g1, be1, m1, v1, w2, g2, be2, m2, v2)
    assert out.shape == (N, C, H, W), out.shape
    max_err = float(jnp.max(jnp.abs(out - ref)))
    assert jnp.allclose(out, ref, atol=1e-2, rtol=1e-2), max_err

    print("KERNEL_OK")
</pallas_src>

<mosaic_0001>
module attributes {stable_mosaic.version = 11 : i64} {
  func.func @basic_block_kernel(%arg0: i32, %arg1: memref<2x16x128xf32, #tpu.memory_space<vmem>>, %arg2: memref<3x128x128xbf16, #tpu.memory_space<vmem>>, %arg3: memref<1x128xf32, #tpu.memory_space<vmem>>, %arg4: memref<3x128x128xbf16, #tpu.memory_space<vmem>>, %arg5: memref<1x128xf32, #tpu.memory_space<vmem>>, %arg6: memref<2x16x128xf32, #tpu.memory_space<vmem>>) attributes {dimension_semantics = [#tpu.dimension_semantics<parallel>], iteration_bounds = array<i64: 4>, scalar_prefetch = 0 : i64, scratch_operands = 0 : i64, tpu.core_type = #tpu.core_type<tc>, window_params = [{transform_indices = @transform_0, window_bounds = array<i64: 2, 16, 128>}, {pipeline_mode = #tpu.pipeline_mode<synchronous>, transform_indices = @transform_1, window_bounds = array<i64: 3, 128, 128>}, {pipeline_mode = #tpu.pipeline_mode<synchronous>, transform_indices = @transform_2, window_bounds = array<i64: 1, 128>}, {pipeline_mode = #tpu.pipeline_mode<synchronous>, transform_indices = @transform_3, window_bounds = array<i64: 3, 128, 128>}, {pipeline_mode = #tpu.pipeline_mode<synchronous>, transform_indices = @transform_4, window_bounds = array<i64: 1, 128>}, {transform_indices = @transform_5, window_bounds = array<i64: 2, 16, 128>}]} {
    %c0 = arith.constant 0 : index
    %c0_0 = arith.constant 0 : index
    %c0_1 = arith.constant 0 : index
    %0 = vector.load %arg1[%c0, %c0_0, %c0_1] : memref<2x16x128xf32, #tpu.memory_space<vmem>>, vector<2x16x128xf32>
    %cst = arith.constant 0.000000e+00 : bf16
    %1 = vector.broadcast %cst : bf16 to vector<2x1x128xbf16>
    %2 = arith.truncf %0 : vector<2x16x128xf32> to vector<2x16x128xbf16>
    %3 = vector.extract_strided_slice %2 {offsets = [0, 0, 0], sizes = [2, 15, 128], strides = [1, 1, 1]} : vector<2x16x128xbf16> to vector<2x15x128xbf16>
    %4 = tpu.concatenate %1, %3 in 1 : vector<2x1x128xbf16>, vector<2x15x128xbf16> -> vector<2x16x128xbf16>
    %5 = vector.extract_strided_slice %2 {offsets = [0, 1, 0], sizes = [2, 15, 128], strides = [1, 1, 1]} : vector<2x16x128xbf16> to vector<2x15x128xbf16>
    %6 = tpu.concatenate %5, %1 in 1 : vector<2x15x128xbf16>, vector<2x1x128xbf16> -> vector<2x16x128xbf16>
    %7 = vector.shape_cast %4 : vector<2x16x128xbf16> to vector<32x128xbf16>
    %c0_2 = arith.constant 0 : index
    %c0_3 = arith.constant 0 : index
    %c0_4 = arith.constant 0 : index
    %8 = vector.load %arg2[%c0_2, %c0_3, %c0_4] : memref<3x128x128xbf16, #tpu.memory_space<vmem>>, vector<1x128x128xbf16>
    %9 = vector.shape_cast %8 : vector<1x128x128xbf16> to vector<128x128xbf16>
    %cst_5 = arith.constant dense<0.000000e+00> : vector<32x128xf32>
    %10 = tpu.matmul %7, %9, %cst_5 {dimension_numbers = #tpu.dot_dimension_numbers<[1], [0], [0], [1], [0, 0, 1, 1], [], []>} : vector<32x128xbf16>, vector<128x128xbf16>, vector<32x128xf32> -> vector<32x128xf32>
    %11 = vector.shape_cast %2 : vector<2x16x128xbf16> to vector<32x128xbf16>
    %c1 = arith.constant 1 : index
    %c0_6 = arith.constant 0 : index
    %c0_7 = arith.constant 0 : index
    %12 = vector.load %arg2[%c1, %c0_6, %c0_7] : memref<3x128x128xbf16, #tpu.memory_space<vmem>>, vector<1x128x128xbf16>
    %13 = vector.shape_cast %12 : vector<1x128x128xbf16> to vector<128x128xbf16>
    %cst_8 = arith.constant dense<0.000000e+00> : vector<32x128xf32>
    %14 = tpu.matmul %11, %13, %cst_8 {dimension_numbers = #tpu.dot_dimension_numbers<[1], [0], [0], [1], [0, 0, 1, 1], [], []>} : vector<32x128xbf16>, vector<128x128xbf16>, vector<32x128xf32> -> vector<32x128xf32>
    %15 = arith.addf %10, %14 : vector<32x128xf32>
    %16 = vector.shape_cast %6 : vector<2x16x128xbf16> to vector<32x128xbf16>
    %c2 = arith.constant 2 : index
    %c0_9 = arith.constant 0 : index
    %c0_10 = arith.constant 0 : index
    %17 = vector.load %arg2[%c2, %c0_9, %c0_10] : memref<3x128x128xbf16, #tpu.memory_space<vmem>>, vector<1x128x128xbf16>
    %18 = vector.shape_cast %17 : vector<1x128x128xbf16> to vector<128x128xbf16>
    %cst_11 = arith.constant dense<0.000000e+00> : vector<32x128xf32>
    %19 = tpu.matmul %16, %18, %cst_11 {dimension_numbers = #tpu.dot_dimension_numbers<[1], [0], [0], [1], [0, 0, 1, 1], [], []>} : vector<32x128xbf16>, vector<128x128xbf16>, vector<32x128xf32> -> vector<32x128xf32>
    %20 = arith.addf %15, %19 : vector<32x128xf32>
    %c0_12 = arith.constant 0 : index
    %c0_13 = arith.constant 0 : index
    %21 = vector.load %arg3[%c0_12, %c0_13] : memref<1x128xf32, #tpu.memory_space<vmem>>, vector<1x128xf32>
    %22 = vector.broadcast %21 : vector<1x128xf32> to vector<32x128xf32>
    %23 = arith.addf %20, %22 : vector<32x128xf32>
    %cst_14 = arith.constant 0.000000e+00 : f32
    %24 = vector.broadcast %cst_14 : f32 to vector<32x128xf32>
    %25 = arith.maximumf %23, %24 : vector<32x128xf32>
    %26 = arith.truncf %25 : vector<32x128xf32> to vector<32x128xbf16>
    %27 = vector.shape_cast %26 : vector<32x128xbf16> to vector<2x16x128xbf16>
    %28 = vector.extract_strided_slice %27 {offsets = [0, 0, 0], sizes = [2, 15, 128], strides = [1, 1, 1]} : vector<2x16x128xbf16> to vector<2x15x128xbf16>
    %29 = tpu.concatenate %1, %28 in 1 : vector<2x1x128xbf16>, vector<2x15x128xbf16> -> vector<2x16x128xbf16>
    %30 = vector.extract_strided_slice %27 {offsets = [0, 1, 0], sizes = [2, 15, 128], strides = [1, 1, 1]} : vector<2x16x128xbf16> to vector<2x15x128xbf16>
    %31 = tpu.concatenate %30, %1 in 1 : vector<2x15x128xbf16>, vector<2x1x128xbf16> -> vector<2x16x128xbf16>
    %32 = vector.shape_cast %29 : vector<2x16x128xbf16> to vector<32x128xbf16>
    %c0_15 = arith.constant 0 : index
    %c0_16 = arith.constant 0 : index
    %c0_17 = arith.constant 0 : index
    %33 = vector.load %arg4[%c0_15, %c0_16, %c0_17] : memref<3x128x128xbf16, #tpu.memory_space<vmem>>, vector<1x128x128xbf16>
    %34 = vector.shape_cast %33 : vector<1x128x128xbf16> to vector<128x128xbf16>
    %cst_18 = arith.constant dense<0.000000e+00> : vector<32x128xf32>
    %35 = tpu.matmul %32, %34, %cst_18 {dimension_numbers = #tpu.dot_dimension_numbers<[1], [0], [0], [1], [0, 0, 1, 1], [], []>} : vector<32x128xbf16>, vector<128x128xbf16>, vector<32x128xf32> -> vector<32x128xf32>
    %36 = vector.shape_cast %27 : vector<2x16x128xbf16> to vector<32x128xbf16>
    %c1_19 = arith.constant 1 : index
    %c0_20 = arith.constant 0 : index
    %c0_21 = arith.constant 0 : index
    %37 = vector.load %arg4[%c1_19, %c0_20, %c0_21] : memref<3x128x128xbf16, #tpu.memory_space<vmem>>, vector<1x128x128xbf16>
    %38 = vector.shape_cast %37 : vector<1x128x128xbf16> to vector<128x128xbf16>
    %cst_22 = arith.constant dense<0.000000e+00> : vector<32x128xf32>
    %39 = tpu.matmul %36, %38, %cst_22 {dimension_numbers = #tpu.dot_dimension_numbers<[1], [0], [0], [1], [0, 0, 1, 1], [], []>} : vector<32x128xbf16>, vector<128x128xbf16>, vector<32x128xf32> -> vector<32x128xf32>
    %40 = arith.addf %35, %39 : vector<32x128xf32>
    %41 = vector.shape_cast %31 : vector<2x16x128xbf16> to vector<32x128xbf16>
    %c2_23 = arith.constant 2 : index
    %c0_24 = arith.constant 0 : index
    %c0_25 = arith.constant 0 : index
    %42 = vector.load %arg4[%c2_23, %c0_24, %c0_25] : memref<3x128x128xbf16, #tpu.memory_space<vmem>>, vector<1x128x128xbf16>
    %43 = vector.shape_cast %42 : vector<1x128x128xbf16> to vector<128x128xbf16>
    %cst_26 = arith.constant dense<0.000000e+00> : vector<32x128xf32>
    %44 = tpu.matmul %41, %43, %cst_26 {dimension_numbers = #tpu.dot_dimension_numbers<[1], [0], [0], [1], [0, 0, 1, 1], [], []>} : vector<32x128xbf16>, vector<128x128xbf16>, vector<32x128xf32> -> vector<32x128xf32>
    %45 = arith.addf %40, %44 : vector<32x128xf32>
    %c0_27 = arith.constant 0 : index
    %c0_28 = arith.constant 0 : index
    %46 = vector.load %arg5[%c0_27, %c0_28] : memref<1x128xf32, #tpu.memory_space<vmem>>, vector<1x128xf32>
    %47 = vector.broadcast %46 : vector<1x128xf32> to vector<32x128xf32>
    %48 = arith.addf %45, %47 : vector<32x128xf32>
    %49 = vector.shape_cast %0 : vector<2x16x128xf32> to vector<32x128xf32>
    %50 = arith.addf %48, %49 : vector<32x128xf32>
    %cst_29 = arith.constant 0.000000e+00 : f32
    %51 = vector.broadcast %cst_29 : f32 to vector<32x128xf32>
    %52 = arith.maximumf %50, %51 : vector<32x128xf32>
    %53 = vector.shape_cast %52 : vector<32x128xf32> to vector<2x16x128xf32>
    %c0_30 = arith.constant 0 : index
    %c0_31 = arith.constant 0 : index
    %c0_32 = arith.constant 0 : index
    %54 = vector.load %arg6[%c0_30, %c0_31, %c0_32] : memref<2x16x128xf32, #tpu.memory_space<vmem>>, vector<2x16x128xf32>
    tpu.vector_store %arg6[%c0_30, %c0_31, %c0_32], %53 {strides = array<i32>} : memref<2x16x128xf32, #tpu.memory_space<vmem>>, vector<2x16x128xf32>,
    return
  }
  func.func @transform_0(%arg0: i32) -> (i32, i32, i32) {
    %c0_i32 = arith.constant 0 : i32
    %c0_i32_0 = arith.constant 0 : i32
    %c0_i32_1 = arith.constant 0 : i32
    return %arg0, %c0_i32, %c0_i32_0 : i32, i32, i32
  }
  func.func @transform_1(%arg0: i32) -> (i32, i32, i32) {
    %c0_i32 = arith.constant 0 : i32
    %c0_i32_0 = arith.constant 0 : i32
    %c0_i32_1 = arith.constant 0 : i32
    %c0_i32_2 = arith.constant 0 : i32
    return %c0_i32, %c0_i32_0, %c0_i32_1 : i32, i32, i32
  }
  func.func @transform_2(%arg0: i32) -> (i32, i32) {
    %c0_i32 = arith.constant 0 : i32
    %c0_i32_0 = arith.constant 0 : i32
    %c0_i32_1 = arith.constant 0 : i32
    return %c0_i32, %c0_i32_0 : i32, i32
  }
  func.func @transform_3(%arg0: i32) -> (i32, i32, i32) {
    %c0_i32 = arith.constant 0 : i32
    %c0_i32_0 = arith.constant 0 : i32
    %c0_i32_1 = arith.constant 0 : i32
    %c0_i32_2 = arith.constant 0 : i32
    return %c0_i32, %c0_i32_0, %c0_i32_1 : i32, i32, i32
  }
  func.func @transform_4(%arg0: i32) -> (i32, i32) {
    %c0_i32 = arith.constant 0 : i32
    %c0_i32_0 = arith.constant 0 : i32
    %c0_i32_1 = arith.constant 0 : i32
    return %c0_i32, %c0_i32_0 : i32, i32
  }
  func.func @transform_5(%arg0: i32) -> (i32, i32, i32) {
    %c0_i32 = arith.constant 0 : i32
    %c0_i32_0 = arith.constant 0 : i32
    %c0_i32_1 = arith.constant 0 : i32
    return %arg0, %c0_i32, %c0_i32_0 : i32, i32, i32
  }
}

</mosaic_0001>

<bundles_post_ra>
// kernel: tile.13
= control target key start
LH: loop header
LB: loop body
LE: loop exit
PB: predicated region body
PF: predicated region fallthrough
CT: control target
= control target key end

     0   :  { %s28_s0 = inlined_call_operand.vmem [shape: f32[8], index: 0, kind: input, shape index: {}]   ;;  %s29_s1 = inlined_call_operand.vmem [shape: f32[16,8], index: 1, kind: output, shape index: {}]  }
   0x1   :  { %v4_v0 = vld [vmem:[%s28_s0] ss:$0 sm:$0xff] }
   0x2   :  { %5 = vst [vmem:[%s29_s1] sm:$0xff] %v4_v0  ;;  %8 = vst [vmem:[%s29_s1 + $0x8] sm:$0xff] %v4_v0 }

// kernel: tile.14
= control target key start
LH: loop header
LB: loop body
LE: loop exit
PB: predicated region body
PF: predicated region fallthrough
CT: control target
= control target key end

     0   :  { %s131_s10 = smov 120   ;;  %s132_s11 = smov 104   ;;  %vm3_vm0 = vcmask 64512   ;;  %vm9_vm1 = vcmask 1048512   ;;  %vm15_vm2 = vcmask 982912   ;;  %vm21_vm3 = vcmask 917312   ;;  %s207_s0 = inlined_call_operand.vmem [shape: f32[16,8], index: 0, kind: input, shape index: {}]   ;;  %s208_s1 = inlined_call_operand.vmem [shape: f32[1,128], index: 1, kind: output, shape index: {}]  }
   0x1   :  { %v101_v0 = vld [vmem:[%s207_s0 + $0xf] sm:$0x1]   ;;  %v103_v1 = vld [vmem:[%s207_s0 + $0xd] sm:$0x1]   ;;  %v102_v2 = vld [vmem:[%s207_s0 + $0xe] sm:$0x1]  }
   0x2   :  { %7 = vrot.lane.b32.xlu0 %v101_v0, %s131_s10  ;;  %19 = vrot.lane.b32.xlu1 %v103_v1, %s132_s11  ;;  %v104_v3 = vld [vmem:[%s207_s0 + $0xc] sm:$0x1]   ;;  %s133_s16 = smov 112   ;;  %s134_s17 = smov 96   ;;  %v105_v4 = vld [vmem:[%s207_s0 + $0xb] sm:$0x1]  }
   0x3   :  { %v106_v5 = vld [vmem:[%s207_s0 + $0xa] sm:$0x1]   ;;  %v2_v6 = vld [vmem:[%s207_s0] sm:$0x1]   ;;  %s135_s24 = smov 88   ;;  %s136_s25 = smov 80  }
   0x4   :  { %4 = vst.msk [vmem:[#allocation0] sm:$0x1] %vm3_vm0, %v2_v6   ;;  %v107_v7 = vld [vmem:[%s207_s0 + $0x9] sm:$0x1]   ;;  %v108_v8 = vld [vmem:[%s207_s0 + $0x8] sm:$0x1]  }
   0x5   :  { %s137_s30 = smov 72   ;;  %s138_s2 = smov 64   ;;  %v109_v9 = vld [vmem:[%s207_s0 + $0x7] sm:$0x1]   ;;  %v110_v10 = vld [vmem:[%s207_s0 + $0x6] sm:$0x1]  }
   0x6   :  { %13 = vrot.lane.b32.xlu0 %v102_v2, %s133_s16  ;;  %25 = vrot.lane.b32.xlu1 %v104_v3, %s134_s17  ;;  %s139_s7 = smov 56   ;;  %s140_s8 = smov 48   ;;  %v111_v11 = vld [vmem:[%s207_s0 + $0x5] sm:$0x1]   ;;  %v112_v12 = vld [vmem:[%s207_s0 + $0x4] sm:$0x1]  }
   0x7   :  { %s141_s13 = smov 40   ;;  %s142_s14 = smov 32   ;;  %v113_v13 = vld [vmem:[%s207_s0 + $0x3] sm:$0x1]   ;;  %v114_v14 = vld [vmem:[%s207_s0 + $0x2] sm:$0x1]  }
   0x8   :  { %s143_s19 = smov 24   ;;  %s144_s20 = smov 16   ;;  %v115_v15 = vld [vmem:[%s207_s0 + $0x1] sm:$0x1]   ;;  %vm27_vm4 = vcmask 851712   ;;  %vm33_vm5 = vcmask 786112  }
   0x9   :  { %s145_s0 = smov 8   ;;  %vm39_vm6 = vcmask 720512   ;;  %vm45_vm7 = vcmask 654912   ;;  %vm51_vm8 = vcmask 589312   ;;  %vm57_vm9 = vcmask 523712  }
   0xa   :  { %31 = vrot.lane.b32.xlu0 %v105_v4, %s135_s24  ;;  %37 = vrot.lane.b32.xlu1 %v106_v5, %s136_s25  ;;  %vm63_vm10 = vcmask 458112   ;;  %vm69_vm11 = vcmask 392512   ;;  %vm75_vm12 = vcmask 326912   ;;  %vm81_vm13 = vcmask 261312  }
   0xb   :  { %vm87_vm14 = vcmask 195712   ;;  %vm93_vm15 = vcmask 130112  }
   0xe   :  { %43 = vrot.lane.b32.xlu0 %v107_v7, %s137_s30  ;;  %49 = vrot.lane.b32.xlu1 %v108_v8, %s138_s2 }
  0x12   :  { %55 = vrot.lane.b32.xlu0 %v109_v9, %s139_s7  ;;  %61 = vrot.lane.b32.xlu1 %v110_v10, %s140_s8 }
  0x16   :  { %67 = vrot.lane.b32.xlu0 %v111_v11, %s141_s13  ;;  %73 = vrot.lane.b32.xlu1 %v112_v12, %s142_s14 }
  0x1a   :  { %79 = vrot.lane.b32.xlu0 %v113_v13, %s143_s19  ;;  %85 = vrot.lane.b32.xlu1 %v114_v14, %s144_s20 }
  0x1e   :  { %91 = vrot.lane.b32.xlu0 %v115_v15, %s145_s0 }
  0x74   :  { %v8_v16 = vpop.permute.xlu0 %7   ;;  %v20_v17 = vpop.permute.xlu1 %19  }
  0x75   :  { %10 = vst.msk [vmem:[#allocation0] sm:$0x1] %vm9_vm1, %v8_v16  }
  0x78   :  { %v14_v18 = vpop.permute.xlu0 %13   ;;  %v26_v19 = vpop.permute.xlu1 %25  }
  0x79   :  { %16 = vst.msk [vmem:[#allocation0] sm:$0x1] %vm15_vm2, %v14_v18  }
  0x7a   :  { %22 = vst.msk [vmem:[#allocation0] sm:$0x1] %vm21_vm3, %v20_v17  }
  0x7b   :  { %28 = vst.msk [vmem:[#allocation0] sm:$0x1] %vm27_vm4, %v26_v19  }
  0x7c   :  { %v32_v20 = vpop.permute.xlu0 %31   ;;  %v38_v21 = vpop.permute.xlu1 %37  }
  0x7d   :  { %34 = vst.msk [vmem:[#allocation0] sm:$0x1] %vm33_vm5, %v32_v20  }
  0x7e   :  { %40 = vst.msk [vmem:[#allocation0] sm:$0x1] %vm39_vm6, %v38_v21  }
  0x80   :  { %v44_v22 = vpop.permute.xlu0 %43   ;;  %v50_v23 = vpop.permute.xlu1 %49  }
  0x81   :  { %46 = vst.msk [vmem:[#allocation0] sm:$0x1] %vm45_vm7, %v44_v22  }
  0x82   :  { %52 = vst.msk [vmem:[#allocation0] sm:$0x1] %vm51_vm8, %v50_v23  }
  0x84   :  { %v56_v24 = vpop.permute.xlu0 %55   ;;  %v62_v25 = vpop.permute.xlu1 %61  }
  0x85   :  { %58 = vst.msk [vmem:[#allocation0] sm:$0x1] %vm57_vm9, %v56_v24  }
  0x86   :  { %64 = vst.msk [vmem:[#allocation0] sm:$0x1] %vm63_vm10, %v62_v25  }
  0x88   :  { %v68_v26 = vpop.permute.xlu0 %67   ;;  %v74_v27 = vpop.permute.xlu1 %73  }
  0x89   :  { %70 = vst.msk [vmem:[#allocation0] sm:$0x1] %vm69_vm11, %v68_v26  }
  0x8a   :  { %76 = vst.msk [vmem:[#allocation0] sm:$0x1] %vm75_vm12, %v74_v27  }
  0x8c   :  { %v80_v28 = vpop.permute.xlu0 %79   ;;  %v86_v29 = vpop.permute.xlu1 %85  }
  0x8d   :  { %82 = vst.msk [vmem:[#allocation0] sm:$0x1] %vm81_vm13, %v80_v28  }
  0x8e   :  { %88 = vst.msk [vmem:[#allocation0] sm:$0x1] %vm87_vm14, %v86_v29  }
  0x90   :  { %v92_v30 = vpop.permute.xlu0 %91  }
  0x91   :  { %94 = vst.msk [vmem:[#allocation0] sm:$0x1] %vm93_vm15, %v92_v30  }
  0x98   :  { %v98_v31 = vld [vmem:[#allocation0] sm:$0x1] }
  0x99   :  { %100 = vst [vmem:[%s208_s1] sm:$0x1] %v98_v31 }

// kernel: basic_block_pallas.1
= control target key start
LH: loop header
LB: loop body
LE: loop exit
PB: predicated region body
PF: predicated region fallthrough
CT: control target
= control target key end

     0   :  { %s1505_s18 = smov 0   ;;  %s1738_s0 = inlined_call_operand.vmem [shape: f32[8,16,128], index: 0, kind: input, shape index: {}]   ;;  %s1739_s1 = inlined_call_operand.vmem [shape: bf16[3,128,128], index: 1, kind: input, shape index: {}]   ;;  %s1740_s2 = inlined_call_operand.vmem [shape: f32[1,128], index: 2, kind: input, shape index: {}]   ;;  %s1741_s3 = inlined_call_operand.vmem [shape: bf16[3,128,128], index: 3, kind: input, shape index: {}]   ;;  %s1742_s4 = inlined_call_operand.vmem [shape: f32[1,128], index: 4, kind: input, shape index: {}]   ;;  %s1743_s5 = inlined_call_operand.vmem [shape: f32[8,16,128], index: 5, kind: output, shape index: {}]  }
   0x1 LB: > { %s1086_s19 = sadd.s32 4294967295, %s1473_s18   ;;  %p1090_p0 = scmp.ge.s32.totalorder %s1473_s18, 1  ;;  %s1473_s18 = sphi %s1505_s18, %s15_s18  }
   0x2   : > { %p189_p1 = scmp.lt.s32.totalorder %s1473_s18, 5 }
   0x4   : > { %p190_p2 = pnand %p1090_p0, %p189_p1 }
   0x5   : > { %v1419_v0 = vld [vmem:[%s1739_s1 + $0x40] sm:$0xff] (!%p190_p2)   ;;  %s1091_s22 = sshll.u32 (!%p190_p2), %s1086_s19, 1  ;;  %v1420_v1 = vld [vmem:[%s1739_s1 + $0x48] sm:$0xff] (!%p190_p2)   ;;  %v1421_v2 = vld [vmem:[%s1739_s1 + $0x50] sm:$0xff] (!%p190_p2)   ;;  %vm257_vm0 = vsmask.f32 (!%p190_p2), 256 }
   0x6   : > { %193 = sbr.rel (%p190_p2) target bundleno = 610 (0x262), region = 40  ;;  %p220_p3 = scmp.lt.s32.totalorder (!%p190_p2), %s1091_s22, 7  ;;  %1275 = vmatprep.subr.bf16.mxu0 (!%p190_p2), %v1419_v0  ;;  %v1422_v3 = vld [vmem:[%s1739_s1 + $0x58] sm:$0xff] (!%p190_p2)   ;;  %v1423_v7 = vld [vmem:[%s1739_s1 + $0x60] sm:$0xff] (!%p190_p2)   ;;  %v1424_v8 = vld [vmem:[%s1739_s1 + $0x68] sm:$0xff] (!%p190_p2)   ;;  %vm256_vm1 = vcmask (!%p190_p2), 1040384  }
   0x7   : > { %1276 = vmatpush3.bf16.msra.mxu0 (!%p190_p2), %v1419_v0  ;;  %v1425_v9 = vld [vmem:[%s1739_s1 + $0x70] sm:$0xff] (!%p190_p2)   ;;  %v1426_v11 = vld [vmem:[%s1739_s1 + $0x78] sm:$0xff] (!%p190_p2)   ;;  %v1427_v15 = vld [vmem:[%s1739_s1] sm:$0xff] (!%p190_p2)   ;;  %vm267_vm3 = vcmask (!%p190_p2), 1047552   ;;  %vm268_vm4 = vsmask.f32 (!%p190_p2), 7424 }
   0x8   : > { %1277 = vmatprep.subr.bf16.mxu0 (!%p190_p2), %v1420_v1  ;;  %v1443_v17 = vld [vmem:[%s1741_s3 + $0x40] sm:$0xff] (!%p190_p2)   ;;  %v1444_v19 = vld [vmem:[%s1741_s3 + $0x48] sm:$0xff] (!%p190_p2)   ;;  %vm1571_vm2 = vmand (!%p190_p2), %vm256_vm1, %vm257_vm0 }
   0x9   : > { %1335 = vmatprep.subr.bf16.mxu1 (!%p190_p2), %v1443_v17  ;;  %v1428_v22 = vld [vmem:[%s1739_s1 + $0x8] sm:$0xff] (!%p190_p2)   ;;  %v1445_v24 = vld [vmem:[%s1741_s3 + $0x50] sm:$0xff] (!%p190_p2)   ;;  %v1446_v25 = vld [vmem:[%s1741_s3 + $0x58] sm:$0xff] (!%p190_p2)  }
   0xa   : > { %1336 = vmatpush3.bf16.msra.mxu1 (!%p190_p2), %v1443_v17  ;;  %v1429_v26 = vld [vmem:[%s1739_s1 + $0x10] sm:$0xff] (!%p190_p2)   ;;  %v1447_v27 = vld [vmem:[%s1741_s3 + $0x60] sm:$0xff] (!%p190_p2)   ;;  %v1430_v28 = vld [vmem:[%s1739_s1 + $0x18] sm:$0xff] (!%p190_p2)  }
   0xb   : > { %1278 = vmatpush3.bf16.msra.mxu0 (!%p190_p2), %v1420_v1  ;;  %1337 = vmatprep.subr.bf16.mxu1 (!%p190_p2), %v1444_v19  ;;  %v1448_v29 = vld [vmem:[%s1741_s3 + $0x68] sm:$0xff] (!%p190_p2)   ;;  %v1431_v30 = vld [vmem:[%s1739_s1 + $0x20] sm:$0xff] (!%p190_p2)   ;;  %v1433_v33 = vld [vmem:[%s1739_s1 + $0x30] sm:$0xff] (!%p190_p2)  }
   0xc   : > { %1279 = vmatprep.subr.bf16.mxu0 (!%p190_p2), %v1421_v2  ;;  %v1432_v31 = vld [vmem:[%s1739_s1 + $0x28] sm:$0xff] (!%p190_p2)   ;;  %v1434_v36 = vld [vmem:[%s1739_s1 + $0x38] sm:$0xff] (!%p190_p2)   ;;  %v1435_v39 = vld [vmem:[%s1739_s1 + $0x80] sm:$0xff] (!%p190_p2)  }
   0xd   : > { %s1749_s22 = smov (!%p220_p3, %s1091_s22), 7  ;;  %vm1622_vm5 = vmand %vm267_vm3, %vm268_vm4  ;;  %v1436_v43 = vld [vmem:[%s1739_s1 + $0x88] sm:$0xff]   ;;  %v1437_v45 = vld [vmem:[%s1739_s1 + $0x90] sm:$0xff]  }
   0xe   : > { %s1213_s27 = sshll.u32 %s1749_s22, 4  ;;  %1338 = vmatpush3.bf16.msra.mxu1 %v1444_v19  ;;  %v1438_v46 = vld [vmem:[%s1739_s1 + $0x98] sm:$0xff]   ;;  %v1439_v47 = vld [vmem:[%s1739_s1 + $0xa0] sm:$0xff]   ;;  %v1440_v48 = vld [vmem:[%s1739_s1 + $0xa8] sm:$0xff]  }
   0xf   : > { %s224_s30 = scalar_lea.vmem %s1738_s0, %s1213_s27  ;;  %1280 = vmatpush3.bf16.msra.mxu0 %v1421_v2  ;;  %1339 = vmatprep.subr.bf16.mxu1 %v1445_v24  ;;  %v1441_v49 = vld [vmem:[%s1739_s1 + $0xb0] sm:$0xff]   ;;  %v1442_v51 = vld [vmem:[%s1739_s1 + $0xb8] sm:$0xff]   ;;  %v1451_v56 = vld [vmem:[%s1741_s3] sm:$0xff]   ;;  %s231_s14 = scalar_lea.vmem %s1743_s5, %s1213_s27 }
  0x10   : > { %v1533_v4 = vld [vmem:[%s224_s30] sm:$0xff]  ;;  %v1535_v5 = vld [vmem:[%s224_s30 + $0x8] sm:$0xff]  ;;  %1281 = vmatprep.subr.bf16.mxu0 %v1422_v3  ;;  %v1558_v14 = vld [vmem:[%s224_s30 + $0x10] sm:$0xff] }
  0x11   : > { %v1539_v6 = vpack.c.bf16 %v1535_v5, %v1533_v4  ;;  %v1563_v16 = vld [vmem:[%s224_s30 + $0x18] sm:$0xff]  ;;  %v1449_v54 = vld [vmem:[%s1741_s3 + $0x70] sm:$0xff]   ;;  %v1153_v57 = vld [vmem:[%s1740_s2] ss:$0 sm:$0xff] }
  0x12   : > { %v1577_v21 = vpack.c.bf16 %v1563_v16, %v1558_v14  ;;  %1340 = vmatpush3.bf16.msra.mxu1 %v1445_v24  ;;  %v1450_v55 = vld [vmem:[%s1741_s3 + $0x78] sm:$0xff]   ;;  %v1463_v20 = vld [vmem:[%s1741_s3 + $0xa0] sm:$0xff]  }
  0x13   : > { %1291 = vmatprep.mubr.bf16.mxu0 %v1539_v6  ;;  %1282 = vmatpush3.bf16.msra.mxu0 %v1422_v3  ;;  %v241_v10 = vshrl.u32 %v1539_v6, 16  ;;  %v244_v13 = vshll.u32 %v1539_v6, 16  ;;  %v1454_v19 = vld [vmem:[%s1741_s3 + $0x18] sm:$0xff]  }
  0x14   : > { %1283 = vmatprep.subr.bf16.mxu0 %v1423_v7  ;;  %1341 = vmatprep.subr.bf16.mxu1 %v1446_v25  ;;  %v248_v32 = vshrl.u32 %v1577_v21, 16  ;;  %v251_v35 = vshll.u32 %v1577_v21, 16 }
  0x15   : > { %v243_v12 = vrot.slane %v241_v10, 7  ;;  %v261_v37 = vrot.slane %v244_v13, 1 }
  0x16   : > { %1342 = vmatpush3.bf16.msra.mxu1 %v1446_v25  ;;  %v250_v34 = vrot.slane %v248_v32, 7  ;;  %v263_v50 = vrot.slane %v251_v35, 1  ;;  %v1458_v25 = vld [vmem:[%s1741_s3 + $0x38] sm:$0xff]  }
  0x17   : > { %1284 = vmatpush3.bf16.msra.mxu0 %v1423_v7  ;;  %v246_v18 = vor.u32 %v244_v13, %v243_v12  ;;  %1343 = vmatprep.subr.bf16.mxu1 %v1447_v27  ;;  %v262_v40 = vor.u32 %v261_v37, %v241_v10  ;;  %v1452_v10 = vld [vmem:[%s1741_s3 + $0x8] sm:$0xff]  }
  0x18   : > { %1285 = vmatprep.subr.bf16.mxu0 %v1424_v8  ;;  %v253_v38 = vor.u32 %v251_v35, %v250_v34  ;;  %v264_v52 = vor.u32 %v263_v50, %v248_v32  ;;  %v1460_v32 = vld [vmem:[%s1741_s3 + $0x88] sm:$0xff]   ;;  %v1461_v35 = vld [vmem:[%s1741_s3 + $0x90] sm:$0xff]  }
  0x19   : > { %v259_v23 = vsel %vm1571_vm2, 0, %v246_v18  ;;  %v270_v44 = vsel %vm1622_vm5, %v262_v40, 0  ;;  %v1464_v37 = vld [vmem:[%s1741_s3 + $0xa8] sm:$0xff]  }
  0x1a   : > { %1344 = vmatpush3.bf16.msra.mxu1 %v1447_v27  ;;  %v260_v42 = vsel %vm1571_vm2, 0, %v253_v38  ;;  %v271_v53 = vsel %vm1622_vm5, %v264_v52, 0  ;;  %v1465_v38 = vld [vmem:[%s1741_s3 + $0xb0] sm:$0xff]  }
  0x1b   : > { %1286 = vmatpush3.bf16.msra.mxu0 %v1424_v8  ;;  %1345 = vmatprep.subr.bf16.mxu1 %v1448_v29 }
  0x1c   : > { %1287 = vmatprep.subr.bf16.mxu0 %v1425_v9 }
  0x1e   : > { %1346 = vmatpush3.bf16.msra.mxu1 %v1448_v29  ;;  %v1459_v29 = vld [vmem:[%s1741_s3 + $0x80] sm:$0xff]  }
  0x1f   : > { %1288 = vmatpush3.bf16.msra.mxu0 %v1425_v9  ;;  %1347 = vmatprep.subr.bf16.mxu1 %v1449_v54 }
  0x20   : > { %1289 = vmatprep.subr.bf16.mxu0 %v1426_v11 }
  0x22   : > { %1348 = vmatpush3.bf16.msra.mxu1 %v1449_v54 }
  0x23   : > { %1290 = vmatpush3.bf16.msra.mxu0 %v1426_v11  ;;  %1349 = vmatprep.subr.bf16.mxu1 %v1450_v55 }
  0x24   : > { %1295 = vmatprep.subr.bf16.mxu0 %v1427_v15 }
  0x26   : > { %1292 = vmatmul.mubr.bf16.vlgmr.msra.gmra.mrb[0].mxu0 %v1577_v21  ;;  %1350 = vmatpush3.bf16.msra.mxu1 %v1450_v55  ;;  %v1455_v21 = vld [vmem:[%s1741_s3 + $0x20] sm:$0xff]  }
  0x27   : > { %1296 = vmatpush3.bf16.msra.mxu0 %v1427_v15  ;;  %1311 = vmatprep.mubr.bf16.mxu0 %v259_v23  ;;  %v1453_v15 = vld [vmem:[%s1741_s3 + $0x10] sm:$0xff]  }
  0x28   : > { %1297 = vmatprep.subr.bf16.mxu0 %v1428_v22  ;;  %1355 = vmatprep.subr.bf16.mxu1 %v1451_v56  ;;  %v1457_v23 = vld [vmem:[%s1741_s3 + $0x30] sm:$0xff]  }
  0x2b   : > { %1298 = vmatpush3.bf16.msra.mxu0 %v1428_v22  ;;  %v1456_v22 = vld [vmem:[%s1741_s3 + $0x28] sm:$0xff]  }
  0x2c   : > { %1299 = vmatprep.subr.bf16.mxu0 %v1429_v26 }
  0x2f   : > { %1300 = vmatpush3.bf16.msra.mxu0 %v1429_v26 }
  0x30   : > { %1301 = vmatprep.subr.bf16.mxu0 %v1430_v28 }
  0x33   : > { %1302 = vmatpush3.bf16.msra.mxu0 %v1430_v28 }
  0x34   : > { %1303 = vmatprep.subr.bf16.mxu0 %v1431_v30 }
  0x37   : > { %1304 = vmatpush3.bf16.msra.mxu0 %v1431_v30 }
  0x38   : > { %1305 = vmatprep.subr.bf16.mxu0 %v1432_v31 }
  0x3b   : > { %1306 = vmatpush3.bf16.msra.mxu0 %v1432_v31 }
  0x3c   : > { %1307 = vmatprep.subr.bf16.mxu0 %v1433_v33 }
  0x3f   : > { %1308 = vmatpush3.bf16.msra.mxu0 %v1433_v33 }
  0x40   : > { %1309 = vmatprep.subr.bf16.mxu0 %v1434_v36 }
  0x43   : > { %1310 = vmatpush3.bf16.msra.mxu0 %v1434_v36  ;;  %v1462_v36 = vld [vmem:[%s1741_s3 + $0x98] sm:$0xff]  }
  0x44   : > { %1315 = vmatprep.subr.bf16.mxu0 %v1435_v39 }
  0x46   : > { %1312 = vmatmul.mubr.bf16.vlgmr.msra.gmra.mrb[0].mxu0 %v260_v42 }
  0x47   : > { %1316 = vmatpush3.bf16.msra.mxu0 %v1435_v39  ;;  %1331 = vmatprep.mubr.bf16.mxu0 %v270_v44  ;;  %v1466_v39 = vld [vmem:[%s1741_s3 + $0xb8] sm:$0xff]   ;;  %v1210_v44 = vld [vmem:[%s1742_s4] ss:$0 sm:$0xff] }
  0x48   : > { %1317 = vmatprep.subr.bf16.mxu0 %v1436_v43 }
  0x4b   : > { %1318 = vmatpush3.bf16.msra.mxu0 %v1436_v43 }
  0x4c   : > { %1319 = vmatprep.subr.bf16.mxu0 %v1437_v45 }
  0x4f   : > { %1320 = vmatpush3.bf16.msra.mxu0 %v1437_v45 }
  0x50   : > { %1321 = vmatprep.subr.bf16.mxu0 %v1438_v46 }
  0x53   : > { %1322 = vmatpush3.bf16.msra.mxu0 %v1438_v46 }
  0x54   : > { %1323 = vmatprep.subr.bf16.mxu0 %v1439_v47 }
  0x57   : > { %1324 = vmatpush3.bf16.msra.mxu0 %v1439_v47 }
  0x58   : > { %1325 = vmatprep.subr.bf16.mxu0 %v1440_v48 }
  0x5b   : > { %1326 = vmatpush3.bf16.msra.mxu0 %v1440_v48 }
  0x5c   : > { %1327 = vmatprep.subr.bf16.mxu0 %v1441_v49 }
  0x5f   : > { %1328 = vmatpush3.bf16.msra.mxu0 %v1441_v49 }
  0x60   : > { %1329 = vmatprep.subr.bf16.mxu0 %v1442_v51 }
  0x63   : > { %1330 = vmatpush3.bf16.msra.mxu0 %v1442_v51 }
  0x66   : > { %1332 = vmatmul.mubr.bf16.vlgmr.msra.gmra.mrb[0].mxu0 %v271_v53 }
 0x139   : > { %v1333_v58 = vpop.f32.mrb[0].mxu0 }
 0x13a   : > { %v626_v59 = vadd.f32 %v1333_v58, %v1153_v57  ;;  %v598_v60 = vpop.f32.mrb[1].mxu0 }
 0x13b   : > { %v624_v61 = vadd.f32 %v1153_v57, %v598_v60  ;;  %v1334_v62 = vpop.f32.mrb[2].mxu0 }
 0x13c   : > { %v627_v63 = vadd.f32 %v1334_v62, %v1153_v57  ;;  %v601_v0 = vpop.f32.mrb[3].mxu0  ;;  %v630_v2 = vmax.f32 %v626_v59, 0.0 }
 0x13d   : > { %v625_v1 = vadd.f32 %v1153_v57, %v601_v0  ;;  %v628_v6 = vmax.f32 %v624_v61, 0.0 }
 0x13e   : > { %v631_v3 = vmax.f32 %v627_v63, 0.0 }
 0x13f   : > { %v629_v7 = vmax.f32 %v625_v1, 0.0 }
 0x140   : > { %v1665_v8 = vpack.c.bf16 %v631_v3, %v630_v2 }
 0x141   : > { %v632_v9 = vpack.c.bf16 %v629_v7, %v628_v6 }
 0x142   : > { %v642_v24 = vshrl.u32 %v1665_v8, 16  ;;  %v645_v28 = vshll.u32 %v1665_v8, 16 }
 0x143   : > { %v635_v11 = vshrl.u32 %v632_v9, 16  ;;  %1351 = vmatprep.mubr.bf16.mxu1 %v632_v9  ;;  %v638_v13 = vshll.u32 %v632_v9, 16 }
 0x144   : > { %1352 = vmatmul.mubr.bf16.vlgmr.msra.gmra.mrb[0].mxu1 %v1665_v8  ;;  %v644_v26 = vrot.slane %v642_v24, 7  ;;  %v654_v40 = vrot.slane %v645_v28, 1 }
 0x145   : > { %1356 = vmatpush3.bf16.msra.mxu1 %v1451_v56  ;;  %v637_v12 = vrot.slane %v635_v11, 7  ;;  %v652_v27 = vrot.slane %v638_v13, 1 }
 0x146   : > { %1357 = vmatprep.subr.bf16.mxu1 %v1452_v10  ;;  %v647_v30 = vor.u32 %v645_v28, %v644_v26  ;;  %v655_v42 = vor.u32 %v654_v40, %v642_v24 }
 0x147   : > { %v640_v17 = vor.u32 %v638_v13, %v637_v12  ;;  %v653_v31 = vor.u32 %v652_v27, %v635_v11 }
 0x148   : > { %v651_v33 = vsel %vm1571_vm2, 0, %v647_v30  ;;  %v659_v43 = vsel %vm1622_vm5, %v655_v42, 0 }
 0x149   : > { %1358 = vmatpush3.bf16.msra.mxu1 %v1452_v10  ;;  %v650_v18 = vsel %vm1571_vm2, 0, %v640_v17  ;;  %v658_v34 = vsel %vm1622_vm5, %v653_v31, 0 }
 0x14a   : > { %1371 = vmatprep.mubr.bf16.mxu1 %v650_v18  ;;  %1359 = vmatprep.subr.bf16.mxu1 %v1453_v15 }
 0x14d   : > { %1360 = vmatpush3.bf16.msra.mxu1 %v1453_v15 }
 0x14e   : > { %1361 = vmatprep.subr.bf16.mxu1 %v1454_v19 }
 0x151   : > { %1362 = vmatpush3.bf16.msra.mxu1 %v1454_v19 }
 0x152   : > { %1363 = vmatprep.subr.bf16.mxu1 %v1455_v21 }
 0x155   : > { %1364 = vmatpush3.bf16.msra.mxu1 %v1455_v21 }
 0x156   : > { %1365 = vmatprep.subr.bf16.mxu1 %v1456_v22 }
 0x159   : > { %1366 = vmatpush3.bf16.msra.mxu1 %v1456_v22 }
 0x15a   : > { %1367 = vmatprep.subr.bf16.mxu1 %v1457_v23 }
 0x15d   : > { %1368 = vmatpush3.bf16.msra.mxu1 %v1457_v23 }
 0x15e   : > { %1369 = vmatprep.subr.bf16.mxu1 %v1458_v25 }
 0x161   : > { %1370 = vmatpush3.bf16.msra.mxu1 %v1458_v25 }
 0x162   : > { %1375 = vmatprep.subr.bf16.mxu1 %v1459_v29 }
 0x164   : > { %1372 = vmatmul.mubr.bf16.vlgmr.msra.gmra.mrb[0].mxu1 %v651_v33 }
 0x165   : > { %1376 = vmatpush3.bf16.msra.mxu1 %v1459_v29  ;;  %1391 = vmatprep.mubr.bf16.mxu1 %v658_v34 }
 0x166   : > { %1377 = vmatprep.subr.bf16.mxu1 %v1460_v32 }
 0x169   : > { %1378 = vmatpush3.bf16.msra.mxu1 %v1460_v32 }
 0x16a   : > { %1379 = vmatprep.subr.bf16.mxu1 %v1461_v35 }
 0x16d   : > { %1380 = vmatpush3.bf16.msra.mxu1 %v1461_v35 }
 0x16e   : > { %1381 = vmatprep.subr.bf16.mxu1 %v1462_v36 }
 0x171   : > { %1382 = vmatpush3.bf16.msra.mxu1 %v1462_v36 }
 0x172   : > { %1383 = vmatprep.subr.bf16.mxu1 %v1463_v20 }
 0x175   : > { %1384 = vmatpush3.bf16.msra.mxu1 %v1463_v20 }
 0x176   : > { %1385 = vmatprep.subr.bf16.mxu1 %v1464_v37 }
 0x179   : > { %1386 = vmatpush3.bf16.msra.mxu1 %v1464_v37 }
 0x17a   : > { %1387 = vmatprep.subr.bf16.mxu1 %v1465_v38 }
 0x17d   : > { %1388 = vmatpush3.bf16.msra.mxu1 %v1465_v38 }
 0x17e   : > { %1389 = vmatprep.subr.bf16.mxu1 %v1466_v39 }
 0x181   : > { %1390 = vmatpush3.bf16.msra.mxu1 %v1466_v39 }
 0x184   : > { %1392 = vmatmul.mubr.bf16.vlgmr.msra.gmra.mrb[0].mxu1 %v659_v43 }
 0x257   : > { %v1393_v45 = vpop.f32.mrb[0].mxu1 }
 0x258   : > { %v1014_v46 = vadd.f32 %v1393_v45, %v1210_v44  ;;  %v986_v47 = vpop.f32.mrb[1].mxu1 }
 0x259   : > { %v1012_v48 = vadd.f32 %v1210_v44, %v986_v47  ;;  %v1394_v49 = vpop.f32.mrb[2].mxu1 }
 0x25a   : > { %v1018_v50 = vadd.f32 %v1014_v46, %v1558_v14  ;;  %v1015_v51 = vadd.f32 %v1394_v49, %v1210_v44  ;;  %v989_v52 = vpop.f32.mrb[3].mxu1 }
 0x25b   : > { %v1016_v53 = vadd.f32 %v1012_v48, %v1533_v4  ;;  %v1013_v54 = vadd.f32 %v1210_v44, %v989_v52 }
 0x25c   : > { %v1019_v41 = vadd.f32 %v1015_v51, %v1563_v16  ;;  %v1022_v57 = vmax.f32 %v1018_v50, 0.0 }
 0x25d   : > { %v1020_v55 = vmax.f32 %v1016_v53, 0.0  ;;  %v1017_v56 = vadd.f32 %v1013_v54, %v1535_v5 }
 0x25e   : > { %1026 = vst [vmem:[%s231_s14 + $0x10] sm:$0xff] %v1022_v57  ;;  %v1023_v14 = vmax.f32 %v1019_v41, 0.0 }
 0x25f   : > { %1024 = vst [vmem:[%s231_s14] sm:$0xff] %v1020_v55  ;;  %v1021_v58 = vmax.f32 %v1017_v56, 0.0 }
 0x260   : > { %1027 = vst [vmem:[%s231_s14 + $0x18] sm:$0xff] %v1023_v14 }
 0x261   : > { %1025 = vst [vmem:[%s231_s14 + $0x8] sm:$0xff] %v1021_v58 }
 0x262 PF: > { %s15_s18 = sadd.s32 1, %s1473_s18  }
 0x263   : > { %p12_p4 = scmp.ge.s32.totalorder %s15_s18, 6  }
 0x265   :  { %14 = sbr.rel (!%p12_p4) target bundleno = 1 (0x1), region = 74 }

</bundles_post_ra>
